<compile_context>
chip_gen: v7x
topology: tpu7x:2x2x1
jax: 0.10.0
libtpu: 0.0.40
codegen_flags: <defaults>
</compile_context>

<pallas_src>
import jax
import jax.numpy as jnp
from jax.experimental import pallas as pl
from jax.experimental.pallas import tpu as pltpu

TRANS_OFFSET = 0
TRANS_DIM = 3


def _translation_loss_kernel(pred_ref, gt_ref, mask_ref, out_ref, num_acc, den_acc):
    # grid = (B tiles, T tiles); T is the reduction axis (last, 'arbitrary').
    j = pl.program_id(1)

    @pl.when(j == 0)
    def _init():
        num_acc[...] = jnp.zeros_like(num_acc)
        den_acc[...] = jnp.zeros_like(den_acc)

    pred = pred_ref[...].astype(jnp.float32)     # [tb, 3, tt]   (T on lanes)
    gt = gt_ref[...].astype(jnp.float32)         # [tb, 3, tt]
    mask = mask_ref[...].astype(jnp.float32)     # [tb, 1, tt]

    # L1 over the 3 trans channels (sublane axis), lane-dense over T.
    l1 = jnp.sum(jnp.abs(pred - gt), axis=1, keepdims=True) * (1.0 / TRANS_DIM)  # [tb,1,tt]

    num_acc[...] += jnp.sum(l1 * mask, axis=-1)  # [tb, 1]  (sum_flat of l1*mask)
    den_acc[...] += jnp.sum(mask, axis=-1)       # [tb, 1]  (sum_flat of mask)

    @pl.when(j == pl.num_programs(1) - 1)
    def _finalize():
        # NOTE: if an entire mask row is zero, den == 0 -> NaN/Inf, matching the
        # PyTorch reference (no guard applied on purpose).
        out_ref[...] = (num_acc[...] / den_acc[...]).astype(out_ref.dtype)


def _choose_b_tile(B: int) -> int:
    # tb must be a multiple of 8 (sublane rule on the [B,1] output / [B,1,T]
    # mask blocks) or equal to B.
    for cand in (64, 32, 16, 8):
        if B % cand == 0:
            return cand
    return B


def _choose_t_tile(T: int, tb: int, itemsize: int, budget_bytes: int = 2 << 20) -> int:
    # Budget is per input tile; 2 inputs x 2 pipeline buffers (+ tiny mask)
    # stays well under v5e's 16 MiB scoped-VMEM default.
    if T % 128 != 0:
        return T  # small / ragged sequence: one full-T block
    max_tt = (budget_bytes // (tb * TRANS_DIM * itemsize)) // 128 * 128
    max_tt = min(T, max(128, max_tt))
    for cand in range(max_tt, 0, -128):
        if T % cand == 0:
            return cand
    return T


def translation_loss(x: jax.Array, target: jax.Array, padding_mask: jax.Array,
                     *, b_tile: int | None = None, t_tile: int | None = None) -> jax.Array:
    """x, target: [B, T, D]; padding_mask: [B, T] -> loss: [B] (float32)."""
    B, T, D = x.shape
    assert target.shape == (B, T, D)
    assert padding_mask.shape == (B, T)

    # Wrapper-side layout plumbing (plain XLA, not compute hoisting):
    # slice the 3 trans channels and put T on the lane axis.
    pred = jnp.transpose(x[..., TRANS_OFFSET:TRANS_OFFSET + TRANS_DIM], (0, 2, 1))      # [B,3,T]
    gt = jnp.transpose(target[..., TRANS_OFFSET:TRANS_OFFSET + TRANS_DIM], (0, 2, 1))   # [B,3,T]
    mask = padding_mask.reshape(B, 1, T)                                                # [B,1,T]

    tb = b_tile if b_tile is not None else _choose_b_tile(B)
    tt = t_tile if t_tile is not None else _choose_t_tile(T, tb, pred.dtype.itemsize)
    assert B % tb == 0 and T % tt == 0, (B, tb, T, tt)
    grid = (B // tb, T // tt)

    out = pl.pallas_call(
        _translation_loss_kernel,
        out_shape=jax.ShapeDtypeStruct((B, 1), jnp.float32),
        grid_spec=pltpu.PrefetchScalarGridSpec(
            num_scalar_prefetch=0,
            grid=grid,
            in_specs=[
                pl.BlockSpec((tb, TRANS_DIM, tt), lambda i, j: (i, 0, j)),
                pl.BlockSpec((tb, TRANS_DIM, tt), lambda i, j: (i, 0, j)),
                pl.BlockSpec((tb, 1, tt), lambda i, j: (i, 0, j)),
            ],
            out_specs=pl.BlockSpec((tb, 1), lambda i, j: (i, 0)),
            scratch_shapes=[
                pltpu.VMEM((tb, 1), jnp.float32),   # num accumulator
                pltpu.VMEM((tb, 1), jnp.float32),   # den accumulator
            ],
        ),
        compiler_params=pltpu.CompilerParams(
            dimension_semantics=("parallel", "arbitrary")),
    )(pred, gt, mask)
    return out.reshape(B)


def translation_loss_ref(x, target, padding_mask):
    pred = x[..., TRANS_OFFSET:TRANS_OFFSET + TRANS_DIM].astype(jnp.float32)
    gt = target[..., TRANS_OFFSET:TRANS_OFFSET + TRANS_DIM].astype(jnp.float32)
    l1 = jnp.mean(jnp.abs(pred - gt), axis=-1)
    m = padding_mask.astype(jnp.float32)
    return jnp.sum(l1 * m, axis=-1) / jnp.sum(m, axis=-1)


if __name__ == "__main__":
    # Case 1: tiny demo shapes (single grid step).
    key = jax.random.PRNGKey(0)
    kx, kt, km = jax.random.split(key, 3)

    B, T, D = 2, 8, 32  # batch, sequence, packed feature vector size
    x = jax.random.normal(kx, (B, T, D), dtype=jnp.float32)
    target = jax.random.normal(kt, (B, T, D), dtype=jnp.float32)
    padding_mask = (jax.random.uniform(km, (B, T)) > 0.3).astype(jnp.float32)
    padding_mask = padding_mask.at[:, 0].set(1.0)  # keep >=1 valid timestep per row

    loss = jax.block_until_ready(translation_loss(x, target, padding_mask))
    ref = translation_loss_ref(x, target, padding_mask)
    assert loss.shape == (B,)
    assert jnp.allclose(loss, ref, rtol=1e-5, atol=1e-6), (loss, ref)

    # Case 2: exercises the tiled T reduction (2 T-tiles, pl.when accumulate)
    # and the batch-parallel grid axis.
    B2, T2, D2 = 8, 256, 16
    kx2, kt2, km2 = jax.random.split(jax.random.PRNGKey(1), 3)
    x2 = jax.random.normal(kx2, (B2, T2, D2), dtype=jnp.float32)
    target2 = jax.random.normal(kt2, (B2, T2, D2), dtype=jnp.float32)
    mask2 = (jax.random.uniform(km2, (B2, T2)) > 0.3).astype(jnp.float32)
    mask2 = mask2.at[:, 0].set(1.0)

    loss2 = jax.block_until_ready(translation_loss(x2, target2, mask2, t_tile=128))
    ref2 = translation_loss_ref(x2, target2, mask2)
    assert loss2.shape == (B2,)
    assert jnp.allclose(loss2, ref2, rtol=1e-5, atol=1e-6), (loss2, ref2)

    print("KERNEL_OK")
</pallas_src>

<mosaic_0001>
module attributes {stable_mosaic.version = 11 : i64} {
  func.func @_translation_loss_kernel(%arg0: i32, %arg1: i32, %arg2: memref<2x3x8xf32, #tpu.memory_space<vmem>>, %arg3: memref<2x3x8xf32, #tpu.memory_space<vmem>>, %arg4: memref<2x1x8xf32, #tpu.memory_space<vmem>>, %arg5: memref<2x1xf32, #tpu.memory_space<vmem>>, %arg6: memref<2x1xf32, #tpu.memory_space<vmem>>, %arg7: memref<2x1xf32, #tpu.memory_space<vmem>>) attributes {dimension_semantics = [#tpu.dimension_semantics<parallel>, #tpu.dimension_semantics<arbitrary>], iteration_bounds = array<i64: 1, 1>, scalar_prefetch = 0 : i64, scratch_operands = 2 : i64, tpu.core_type = #tpu.core_type<tc>, window_params = [{transform_indices = @transform_0, window_bounds = array<i64: 2, 3, 8>}, {transform_indices = @transform_1, window_bounds = array<i64: 2, 3, 8>}, {transform_indices = @transform_2, window_bounds = array<i64: 2, 1, 8>}, {transform_indices = @transform_3, window_bounds = array<i64: 2, 1>}]} {
    %c0_i32 = arith.constant 0 : i32
    %0 = arith.cmpi eq, %arg1, %c0_i32 : i32
    %1 = arith.extui %0 : i1 to i32
    %c0_i32_0 = arith.constant 0 : i32
    %2 = arith.cmpi ne, %1, %c0_i32_0 : i32
    scf.if %2 {
      %cst_22 = arith.constant 0.000000e+00 : f32
      %24 = vector.broadcast %cst_22 : f32 to vector<2x1xf32>
      %c0_23 = arith.constant 0 : index
      %c0_24 = arith.constant 0 : index
      %25 = vector.load %arg6[%c0_23, %c0_24] : memref<2x1xf32, #tpu.memory_space<vmem>>, vector<2x1xf32>
      tpu.vector_store %arg6[%c0_23, %c0_24], %24 {strides = array<i32>} : memref<2x1xf32, #tpu.memory_space<vmem>>, vector<2x1xf32>,
      %cst_25 = arith.constant 0.000000e+00 : f32
      %26 = vector.broadcast %cst_25 : f32 to vector<2x1xf32>
      %c0_26 = arith.constant 0 : index
      %c0_27 = arith.constant 0 : index
      %27 = vector.load %arg7[%c0_26, %c0_27] : memref<2x1xf32, #tpu.memory_space<vmem>>, vector<2x1xf32>
      tpu.vector_store %arg7[%c0_26, %c0_27], %26 {strides = array<i32>} : memref<2x1xf32, #tpu.memory_space<vmem>>, vector<2x1xf32>,
    } else {
    }
    %c0 = arith.constant 0 : index
    %c0_1 = arith.constant 0 : index
    %c0_2 = arith.constant 0 : index
    %3 = vector.load %arg2[%c0, %c0_1, %c0_2] : memref<2x3x8xf32, #tpu.memory_space<vmem>>, vector<2x3x8xf32>
    %c0_3 = arith.constant 0 : index
    %c0_4 = arith.constant 0 : index
    %c0_5 = arith.constant 0 : index
    %4 = vector.load %arg3[%c0_3, %c0_4, %c0_5] : memref<2x3x8xf32, #tpu.memory_space<vmem>>, vector<2x3x8xf32>
    %c0_6 = arith.constant 0 : index
    %c0_7 = arith.constant 0 : index
    %c0_8 = arith.constant 0 : index
    %5 = vector.load %arg4[%c0_6, %c0_7, %c0_8] : memref<2x1x8xf32, #tpu.memory_space<vmem>>, vector<2x1x8xf32>
    %6 = arith.subf %3, %4 : vector<2x3x8xf32>
    %7 = math.absf %6 : vector<2x3x8xf32>
    %cst = arith.constant dense<0.000000e+00> : vector<2x8xf32>
    %8 = vector.multi_reduction <add>, %7, %cst [1] : vector<2x3x8xf32> to vector<2x8xf32>
    %9 = vector.shape_cast %8 : vector<2x8xf32> to vector<2x1x8xf32>
    %cst_9 = arith.constant 0.333333343 : f32
    %10 = vector.broadcast %cst_9 : f32 to vector<2x1x8xf32>
    %11 = arith.mulf %9, %10 : vector<2x1x8xf32>
    %c0_10 = arith.constant 0 : index
    %c0_11 = arith.constant 0 : index
    %12 = vector.load %arg6[%c0_10, %c0_11] : memref<2x1xf32, #tpu.memory_space<vmem>>, vector<2x1xf32>
    %13 = arith.mulf %11, %5 : vector<2x1x8xf32>
    %cst_12 = arith.constant dense<0.000000e+00> : vector<2x1xf32>
    %14 = vector.multi_reduction <add>, %13, %cst_12 [2] : vector<2x1x8xf32> to vector<2x1xf32>
    %15 = arith.addf %12, %14 : vector<2x1xf32>
    %c0_13 = arith.constant 0 : index
    %c0_14 = arith.constant 0 : index
    %16 = vector.load %arg6[%c0_13, %c0_14] : memref<2x1xf32, #tpu.memory_space<vmem>>, vector<2x1xf32>
    tpu.vector_store %arg6[%c0_13, %c0_14], %15 {strides = array<i32>} : memref<2x1xf32, #tpu.memory_space<vmem>>, vector<2x1xf32>,
    %c0_15 = arith.constant 0 : index
    %c0_16 = arith.constant 0 : index
    %17 = vector.load %arg7[%c0_15, %c0_16] : memref<2x1xf32, #tpu.memory_space<vmem>>, vector<2x1xf32>
    %cst_17 = arith.constant dense<0.000000e+00> : vector<2x1xf32>
    %18 = vector.multi_reduction <add>, %5, %cst_17 [2] : vector<2x1x8xf32> to vector<2x1xf32>
    %19 = arith.addf %17, %18 : vector<2x1xf32>
    %c0_18 = arith.constant 0 : index
    %c0_19 = arith.constant 0 : index
    %20 = vector.load %arg7[%c0_18, %c0_19] : memref<2x1xf32, #tpu.memory_space<vmem>>, vector<2x1xf32>
    tpu.vector_store %arg7[%c0_18, %c0_19], %19 {strides = array<i32>} : memref<2x1xf32, #tpu.memory_space<vmem>>, vector<2x1xf32>,
    %c0_i32_20 = arith.constant 0 : i32
    %21 = arith.cmpi eq, %arg1, %c0_i32_20 : i32
    %22 = arith.extui %21 : i1 to i32
    %c0_i32_21 = arith.constant 0 : i32
    %23 = arith.cmpi ne, %22, %c0_i32_21 : i32
    scf.if %23 {
      %c0_22 = arith.constant 0 : index
      %c0_23 = arith.constant 0 : index
      %24 = vector.load %arg6[%c0_22, %c0_23] : memref<2x1xf32, #tpu.memory_space<vmem>>, vector<2x1xf32>
      %c0_24 = arith.constant 0 : index
      %c0_25 = arith.constant 0 : index
      %25 = vector.load %arg7[%c0_24, %c0_25] : memref<2x1xf32, #tpu.memory_space<vmem>>, vector<2x1xf32>
      %26 = arith.divf %24, %25 : vector<2x1xf32>
      %c0_26 = arith.constant 0 : index
      %c0_27 = arith.constant 0 : index
      %27 = vector.load %arg5[%c0_26, %c0_27] : memref<2x1xf32, #tpu.memory_space<vmem>>, vector<2x1xf32>
      tpu.vector_store %arg5[%c0_26, %c0_27], %26 {strides = array<i32>} : memref<2x1xf32, #tpu.memory_space<vmem>>, vector<2x1xf32>,
    } else {
    }
    return
  }
  func.func @transform_0(%arg0: i32, %arg1: i32) -> (i32, i32, i32) {
    %c0_i32 = arith.constant 0 : i32
    %c0_i32_0 = arith.constant 0 : i32
    return %arg0, %c0_i32, %arg1 : i32, i32, i32
  }
  func.func @transform_1(%arg0: i32, %arg1: i32) -> (i32, i32, i32) {
    %c0_i32 = arith.constant 0 : i32
    %c0_i32_0 = arith.constant 0 : i32
    return %arg0, %c0_i32, %arg1 : i32, i32, i32
  }
  func.func @transform_2(%arg0: i32, %arg1: i32) -> (i32, i32, i32) {
    %c0_i32 = arith.constant 0 : i32
    %c0_i32_0 = arith.constant 0 : i32
    return %arg0, %c0_i32, %arg1 : i32, i32, i32
  }
  func.func @transform_3(%arg0: i32, %arg1: i32) -> (i32, i32) {
    %c0_i32 = arith.constant 0 : i32
    %c0_i32_0 = arith.constant 0 : i32
    return %arg0, %c0_i32 : i32, i32
  }
}

</mosaic_0001>

<bundles_post_ra>
// kernel: tpu_custom_call.1
= control target key start
LH: loop header
LB: loop body
LE: loop exit
PB: predicated region body
PF: predicated region fallthrough
CT: control target
= control target key end

     0   :  { %vm51_vm0 = vcmask 57344   ;;  %vm31_vm1 = vcmask 59392   ;;  %vm18_vm2 = vcmask 1024   ;;  %v96_v25 = vmov 0.0   ;;  %s147_s2 = inlined_call_operand.vmem [shape: f32[2,1,8], index: 2, kind: input, shape index: {}]   ;;  %s148_s0 = inlined_call_operand.vmem [shape: f32[2,3,8], index: 0, kind: input, shape index: {}]   ;;  %s149_s1 = inlined_call_operand.vmem [shape: f32[2,3,8], index: 1, kind: input, shape index: {}]   ;;  %s150_s3 = inlined_call_operand.vmem [shape: f32[2,1], index: 3, kind: output, shape index: {}]  }
   0x1   :  { %v26_v0 = vld [vmem:[%s147_s2 + $0x1] sm:$0x1]  ;;  %v25_v1 = vld [vmem:[%s147_s2] sm:$0x1]  ;;  %v22_v2 = vld [vmem:[%s148_s0 + $0x4] sm:$0x7] }
   0x2   :  { %v71_v3 = vsel %vm51_vm0, %v26_v0, 0.0  ;;  %v24_v4 = vld [vmem:[%s149_s1 + $0x4] sm:$0x7]  ;;  %v21_v5 = vld [vmem:[%s148_s0] sm:$0x7]  ;;  %v68_v8 = vsel %vm51_vm0, %v25_v1, 0.0 }
   0x3   :  { %72 = vadd.xlane.f32.xlu0 %v71_v3  ;;  %v28_v6 = vsub.f32 %v22_v2, %v24_v4  ;;  %v23_v7 = vld [vmem:[%s149_s1] sm:$0x7]  ;;  %20 = vst.msk [vmem:[#allocation3] sm:$0x3] %vm18_vm2, %v96_v25  ;;  %19 = vst.msk [vmem:[#allocation2] sm:$0x3] %vm18_vm2, %v96_v25 }
   0x4   :  { %v27_v9 = vsub.f32 %v21_v5, %v23_v7  ;;  %vm61_vm3 = vcmask 1041409  }
   0x5   :  { %v30_v10 = vand.u32 2147483647, %v28_v6 }
   0x6   :  { %v29_v11 = vand.u32 2147483647, %v27_v9 }
   0x7   :  { %69 = vadd.xlane.f32.xlu0 %v68_v8  ;;  %v39_v12 = vsel %vm31_vm1, %v30_v10, 0.0 }
   0x8   :  { %v40_v13 = vrot.slane %v39_v12, 4  ;;  %v32_v14 = vsel %vm31_vm1, %v29_v11, 0.0 }
   0x9   :  { %v33_v15 = vrot.slane %v32_v14, 4 }
   0xa   :  { %v41_v16 = vadd.f32 %v40_v13, %v39_v12  ;;  %v67_v35 = vld [vmem:[#allocation3] sm:$0x3]  ;;  %v48_v42 = vld [vmem:[#allocation2] sm:$0x3] }
   0xb   :  { %v34_v17 = vadd.f32 %v33_v15, %v32_v14 }
   0xc   :  { %v42_v18 = vrot.slane %v41_v16, 2 }
   0xd   :  { %v35_v19 = vrot.slane %v34_v17, 2 }
   0xe   :  { %v43_v20 = vadd.f32 %v42_v18, %v41_v16 }
   0xf   :  { %v36_v21 = vadd.f32 %v35_v19, %v34_v17 }
  0x10   :  { %v44_v22 = vrot.slane %v43_v20, 1 }
  0x11   :  { %v37_v23 = vrot.slane %v36_v21, 1 }
  0x12   :  { %v45_v24 = vadd.f32 %v44_v22, %v43_v20 }
  0x13   :  { %v38_v26 = vadd.f32 %v37_v23, %v36_v21 }
  0x14   :  { %v47_v27 = vmul.f32 0.33333334, %v45_v24 }
  0x15   :  { %v46_v28 = vmul.f32 0.33333334, %v38_v26 }
  0x16   :  { %v50_v29 = vmul.f32 %v47_v27, %v26_v0 }
  0x17   :  { %v49_v30 = vmul.f32 %v46_v28, %v25_v1 }
  0x18   :  { %v55_v31 = vsel %vm51_vm0, %v50_v29, 0.0 }
  0x19   :  { %56 = vadd.xlane.f32.xlu1 %v55_v31  ;;  %v52_v32 = vsel %vm51_vm0, %v49_v30, 0.0 }
  0x1d   :  { %53 = vadd.xlane.f32.xlu1 %v52_v32 }
  0x90   :  { %v73_v33 = vpop.xlane.xlu0 %72 }
  0x91   :  { %v76_v34 = vrot.slane %v73_v33, 7 }
  0x94   :  { %v70_v36 = vpop.xlane.xlu0 %69 }
  0x95   :  { %v77_v37 = vsel %vm61_vm3, %v76_v34, %v70_v36 }
  0x96   :  { %v79_v38 = vadd.f32 %v77_v37, %v67_v35 }
  0x98   :  { %80 = vst.msk [vmem:[#allocation3] sm:$0x3] %vm18_vm2, %v79_v38 }
  0x9f   :  { %v85_v40 = vld [vmem:[#allocation3] sm:$0x3] }
  0xa0   :  { %94 = vrcp.f32 %v85_v40 }
  0xa6   :  { %v57_v39 = vpop.xlane.xlu1 %56 }
  0xa7   :  { %v60_v41 = vrot.slane %v57_v39, 7 }
  0xaa   :  { %v54_v43 = vpop.xlane.xlu1 %53  ;;  %v95_v46 = vpop.eup %94 }
  0xab   :  { %v62_v44 = vsel %vm61_vm3, %v60_v41, %v54_v43 }
  0xac   :  { %v64_v45 = vadd.f32 %v62_v44, %v48_v42 }
  0xae   :  { %66 = vst.msk [vmem:[#allocation2] sm:$0x3] %vm18_vm2, %v64_v45 }
  0xb5   :  { %v84_v47 = vld [vmem:[#allocation2] sm:$0x3] }
  0xb6   :  { %v87_v48 = vmul.f32 %v95_v46, %v84_v47 }
  0xb8   :  { %88 = vst.msk [vmem:[%s150_s3] sm:$0x3] %vm18_vm2, %v87_v48 }

</bundles_post_ra>
